<compile_context>
chip_gen: v5e
topology: v5e:2x2
jax: 0.10.0
libtpu: 0.0.40
codegen_flags: <defaults>
</compile_context>

<pallas_src>
import math

import jax
import jax.numpy as jnp
from jax.experimental import pallas as pl
from jax.experimental.pallas import tpu as pltpu


def _round_up(x, m):
    return ((x + m - 1) // m) * m


def _cdiv(a, b):
    return -(-a // b)


def _choose_tile_m(m, max_tile=1024):
    """Frames-per-tile. Keeps M padding < 16 rows and uses >= 2 tiles for
    m > 64 so the 'parallel' grid axes feed both v7x TensorCores."""
    if m <= 16:
        return 16
    n_tiles = _cdiv(m, max_tile)
    if m > 64 and n_tiles < 2:
        n_tiles = 2
    if n_tiles > 1 and n_tiles % 2:
        n_tiles += 1
    return _round_up(_cdiv(m, n_tiles), 16)


# ----------------------------- Pallas kernel --------------------------------
def _windowed_dft(x_chunks, overlap, w, *, n_frames, tm, hop, q, n_out, out_dtype):
    """x_chunks: (B, rows, hop) f32 hop-chunked signal.
    overlap:  (B, n_tiles, max(q-1,1), hop) f32, the q-1 chunks following
              each tile's last chunk.
    w:        (q*hop, n_out) windowed-DFT weights (zero rows beyond n_fft).
    Returns (B, n_frames, n_out) interleaved [re0, im0, re1, im1, ...]."""
    B = x_chunks.shape[0]
    n_tiles = _cdiv(n_frames, tm)
    k_rows = w.shape[0]
    assert k_rows == q * hop
    compute_dtype = w.dtype
    qm1 = overlap.shape[2]

    def kernel(x_ref, ov_ref, w_ref, out_ref):
        a = x_ref[...]                                         # (tm, hop) f32
        if q > 1:
            # Extended span: this tile's tm chunks + the q-1 overlap chunks.
            ext = jnp.concatenate([a, ov_ref[...]], axis=0)    # (tm+q-1, hop)
        else:
            ext = a
        acc = None
        for j in range(q):
            # Frame f needs chunks f .. f+q-1; polyphase term j is the
            # j-shifted view of the span (static slice, built in VMEM only).
            lhs = (a if j == 0 else ext[j:j + tm, :]).astype(compute_dtype)
            part = jnp.dot(
                lhs,
                w_ref[j * hop:(j + 1) * hop, :],
                preferred_element_type=jnp.float32,
            )
            acc = part if acc is None else acc + part
        out_ref[...] = acc.astype(out_ref.dtype)

    flops = 2 * B * n_tiles * tm * k_rows * n_out
    bytes_accessed = (
        B * n_tiles * tm * hop * x_chunks.dtype.itemsize
        + overlap.size * overlap.dtype.itemsize
        + w.size * w.dtype.itemsize
        + B * n_frames * n_out * jnp.dtype(out_dtype).itemsize
    )

    return pl.pallas_call(
        kernel,
        out_shape=jax.ShapeDtypeStruct((B, n_frames, n_out), out_dtype),
        grid=(B, n_tiles),
        in_specs=[
            # hop-chunked signal tile: (tm, hop); last dim == full dim.
            pl.BlockSpec((None, tm, hop), lambda b, i: (b, i, 0)),
            # q-1 overlap chunks for this tile.
            pl.BlockSpec((None, None, qm1, hop), lambda b, i: (b, i, 0, 0)),
            # DFT weights: constant block index -> DMA'd once, stays resident.
            pl.BlockSpec((k_rows, n_out), lambda b, i: (0, 0)),
        ],
        # Exact logical output; partial last M block is masked on store.
        out_specs=pl.BlockSpec((None, tm, n_out), lambda b, i: (b, i, 0)),
        compiler_params=pltpu.CompilerParams(
            dimension_semantics=("parallel", "parallel"),
            # <= 32 MiB keeps headroom on every generation (v7x has 64 MiB).
            vmem_limit_bytes=32 * 1024 * 1024,
        ),
        cost_estimate=pl.CostEstimate(
            flops=flops, transcendentals=0, bytes_accessed=bytes_accessed
        ),
    )(x_chunks, overlap, w)


# ------------------------------- STFT module ---------------------------------
class STFT:
    """JAX/Pallas port of the SpeechBrain STFT module (forward only)."""

    def __init__(
        self,
        sample_rate,
        win_length=25,
        hop_length=10,
        n_fft=400,
        window_fn=None,
        normalized_stft=False,
        center=True,
        pad_mode="constant",
        onesided=True,
        compute_dtype=jnp.bfloat16,   # matmul dtype (f32 acc); f32 for accuracy
        out_dtype=jnp.float32,        # bf16 halves the dominant output HBM flow
    ):
        self.sample_rate = sample_rate
        self.n_fft = n_fft
        self.normalized_stft = normalized_stft
        self.center = center
        self.pad_mode = pad_mode
        self.onesided = onesided
        self.out_dtype = out_dtype
        self.win_length = int(round(sample_rate / 1000.0 * win_length))
        self.hop_length = int(round(sample_rate / 1000.0 * hop_length))
        if self.win_length > self.n_fft:
            raise ValueError("win_length must be <= n_fft")
        if self.hop_length <= 0:
            raise ValueError("hop_length must be positive")

        if window_fn is None:
            # Periodic Hamming window (torch.hamming_window default).
            nw = jnp.arange(self.win_length, dtype=jnp.float32)
            window = 0.54 - 0.46 * jnp.cos(2.0 * math.pi * nw / self.win_length)
        else:
            window = jnp.asarray(window_fn(self.win_length), dtype=jnp.float32)

        # torch.stft centers a shorter window inside the n_fft-long frame.
        left = (self.n_fft - self.win_length) // 2
        window_padded = jnp.zeros((self.n_fft,), jnp.float32)
        window_padded = window_padded.at[left:left + self.win_length].set(window)

        n_freq = self.n_fft // 2 + 1 if self.onesided else self.n_fft
        self.n_freq = n_freq
        self.n_out = 2 * n_freq

        # Polyphase factor: a frame spans q hop-sized chunks of the signal.
        self.q = _cdiv(self.n_fft, self.hop_length)
        k_rows = self.q * self.hop_length

        nn = jnp.arange(self.n_fft, dtype=jnp.float32)[:, None]
        kk = jnp.arange(n_freq, dtype=jnp.float32)[None, :]
        ang = 2.0 * math.pi * nn * kk / float(self.n_fft)
        cos_m = window_padded[:, None] * jnp.cos(ang)    # (n_fft, n_freq)
        sin_m = window_padded[:, None] * -jnp.sin(ang)   # (n_fft, n_freq)
        # Interleave real/imag columns [re0, im0, re1, im1, ...] so the final
        # reshape to (..., n_freq, 2) is free.
        w = jnp.stack([cos_m, sin_m], axis=-1).reshape(self.n_fft, self.n_out)
        if self.normalized_stft:
            # torch.stft(normalized=True) orthonormal scaling, folded in.
            w = w * (float(self.n_fft) ** -0.5)
        if k_rows > self.n_fft:
            w = jnp.pad(w, ((0, k_rows - self.n_fft), (0, 0)))
        self.w = w.astype(compute_dtype)

    # -------------------------- core 2-D path --------------------------------
    def _stft_2d(self, x):
        """x: (B, T) -> (B, n_frames, n_freq, 2)."""
        x = jnp.asarray(x, jnp.float32)
        B, _ = x.shape
        if self.center:
            pad = self.n_fft // 2
            mode = {
                "constant": "constant",
                "reflect": "reflect",
                "replicate": "edge",
                "circular": "wrap",
            }.get(self.pad_mode, "constant")
            x = jnp.pad(x, ((0, 0), (pad, pad)), mode=mode)

        T_sig = x.shape[1]
        if T_sig < self.n_fft:
            raise ValueError("input is too short for a single STFT frame")
        hop = self.hop_length
        q = self.q
        n_frames = 1 + (T_sig - self.n_fft) // hop

        tm = _choose_tile_m(n_frames)
        n_tiles = _cdiv(n_frames, tm)

        # Chunk the signal into hop-sized rows (free reshape); zero-pad the
        # tail so every tile's blocks (and its q-1 overlap chunks) exist.
        rows_needed = n_tiles * tm + (q - 1)
        rows_total = max(rows_needed, _cdiv(T_sig, hop))
        pad_t = rows_total * hop - T_sig
        if pad_t:
            x = jnp.pad(x, ((0, 0), (0, pad_t)))
        x_chunks = x.reshape(B, rows_total, hop)

        if q > 1:
            row_idx = (
                (jnp.arange(n_tiles)[:, None] + 1) * tm
                + jnp.arange(q - 1)[None, :]
            )
            overlap = x_chunks[:, row_idx, :]     # (B, n_tiles, q-1, hop), tiny
        else:
            overlap = jnp.zeros((B, n_tiles, 1, hop), x_chunks.dtype)

        out = _windowed_dft(
            x_chunks,
            overlap,
            self.w,
            n_frames=n_frames,
            tm=tm,
            hop=hop,
            q=q,
            n_out=self.n_out,
            out_dtype=self.out_dtype,
        )
        # Interleaved layout -> free reshape, no slicing/copy passes.
        return out.reshape(B, n_frames, self.n_freq, 2)

    def __call__(self, x):
        """Matches the PyTorch forward:
        2D input (B, T)    -> (B, n_frames, n_freq, 2)
        3D input (B, T, C) -> (B, n_frames, n_freq, 2, C)
        """
        if x.ndim == 3:
            B, T, C = x.shape
            x2 = jnp.transpose(x, (0, 2, 1)).reshape(B * C, T)
            s = self._stft_2d(x2)                      # (B*C, nF, nfreq, 2)
            s = s.reshape(B, C, s.shape[1], s.shape[2], 2)
            return jnp.transpose(s, (0, 2, 3, 4, 1))
        return self._stft_2d(x)


# --------------------------------- main ---------------------------------------
if __name__ == "__main__":
    # 1600 Hz, 25 ms window (40 samples), 10 ms hop (16 samples), n_fft = 64.
    stft = STFT(sample_rate=1600, win_length=25, hop_length=10, n_fft=64)

    key = jax.random.PRNGKey(0)
    x = jax.random.normal(key, (2, 320), dtype=jnp.float32)   # (batch, time)

    out = jax.block_until_ready(stft(x))
    assert out.shape == (2, 1 + 320 // stft.hop_length, stft.n_fft // 2 + 1, 2), out.shape

    # Reference: jnp.fft.rfft of explicitly windowed frames (full f32).
    pad = stft.n_fft // 2
    xp = jnp.pad(x, ((0, 0), (pad, pad)))
    n_frames = 1 + (xp.shape[1] - stft.n_fft) // stft.hop_length
    idx = (
        jnp.arange(n_frames)[:, None] * stft.hop_length
        + jnp.arange(stft.n_fft)[None, :]
    )
    frames = xp[:, idx]
    left = (stft.n_fft - stft.win_length) // 2
    n = jnp.arange(stft.win_length, dtype=jnp.float32)
    win = 0.54 - 0.46 * jnp.cos(2.0 * math.pi * n / stft.win_length)
    win_full = (
        jnp.zeros((stft.n_fft,), jnp.float32)
        .at[left:left + stft.win_length]
        .set(win)
    )
    ref_c = jnp.fft.rfft(frames * win_full[None, None, :], n=stft.n_fft, axis=-1)
    ref = jnp.stack([ref_c.real, ref_c.imag], axis=-1)
    scale = float(jnp.max(jnp.abs(ref)))
    err = float(jnp.max(jnp.abs(out - ref)))
    assert err <= 3e-2 * (scale + 1.0), (err, scale)

    # Full-f32 compute path: tighter tolerance.
    stft32 = STFT(
        sample_rate=1600, win_length=25, hop_length=10, n_fft=64,
        compute_dtype=jnp.float32,
    )
    out32 = jax.block_until_ready(stft32(x))
    err32 = float(jnp.max(jnp.abs(out32 - ref)))
    assert err32 <= 1e-3 * (scale + 1.0), (err32, scale)

    # Multi-channel (B, T, C) path: shape check.
    x3 = jax.random.normal(jax.random.PRNGKey(1), (2, 320, 3), dtype=jnp.float32)
    out3 = jax.block_until_ready(stft(x3))
    assert out3.shape == (2, 21, 33, 2, 3), out3.shape

    print("KERNEL_OK")
</pallas_src>

<mosaic_0001>
module attributes {stable_mosaic.version = 11 : i64} {
  func.func @kernel(%arg0: i32, %arg1: i32, %arg2: memref<1x32x16xf32, #tpu.memory_space<vmem>>, %arg3: memref<1x1x3x16xf32, #tpu.memory_space<vmem>>, %arg4: memref<64x66xbf16, #tpu.memory_space<vmem>>, %arg5: memref<1x32x66xf32, #tpu.memory_space<vmem>>) attributes {dimension_semantics = [#tpu.dimension_semantics<parallel>, #tpu.dimension_semantics<parallel>], iteration_bounds = array<i64: 2, 1>, scalar_prefetch = 0 : i64, scratch_operands = 0 : i64, tpu.core_type = #tpu.core_type<tc>, window_params = [{transform_indices = @transform_0, window_bounds = array<i64: 1, 32, 16>}, {transform_indices = @transform_1, window_bounds = array<i64: 1, 1, 3, 16>}, {pipeline_mode = #tpu.pipeline_mode<synchronous>, transform_indices = @transform_2, window_bounds = array<i64: 64, 66>}, {transform_indices = @transform_3, window_bounds = array<i64: 1, 32, 66>}]} {
    %c0 = arith.constant 0 : index
    %c0_0 = arith.constant 0 : index
    %c0_1 = arith.constant 0 : index
    %0 = vector.load %arg2[%c0, %c0_0, %c0_1] : memref<1x32x16xf32, #tpu.memory_space<vmem>>, vector<1x32x16xf32>
    %1 = vector.shape_cast %0 : vector<1x32x16xf32> to vector<32x16xf32>
    %c0_2 = arith.constant 0 : index
    %c0_3 = arith.constant 0 : index
    %c0_4 = arith.constant 0 : index
    %c0_5 = arith.constant 0 : index
    %2 = vector.load %arg3[%c0_2, %c0_3, %c0_4, %c0_5] : memref<1x1x3x16xf32, #tpu.memory_space<vmem>>, vector<1x1x3x16xf32>
    %3 = vector.shape_cast %2 : vector<1x1x3x16xf32> to vector<3x16xf32>
    %4 = tpu.concatenate %1, %3 in 0 : vector<32x16xf32>, vector<3x16xf32> -> vector<35x16xf32>
    %5 = arith.truncf %1 : vector<32x16xf32> to vector<32x16xbf16>
    %c0_6 = arith.constant 0 : index
    %c0_7 = arith.constant 0 : index
    %6 = vector.load %arg4[%c0_6, %c0_7] : memref<64x66xbf16, #tpu.memory_space<vmem>>, vector<16x66xbf16>
    %cst = arith.constant dense<0.000000e+00> : vector<32x66xf32>
    %7 = tpu.matmul %5, %6, %cst {dimension_numbers = #tpu.dot_dimension_numbers<[1], [0], [0], [1], [0, 0, 1, 1], [], []>} : vector<32x16xbf16>, vector<16x66xbf16>, vector<32x66xf32> -> vector<32x66xf32>
    %8 = vector.extract_strided_slice %4 {offsets = [1, 0], sizes = [32, 16], strides = [1, 1]} : vector<35x16xf32> to vector<32x16xf32>
    %9 = arith.truncf %8 : vector<32x16xf32> to vector<32x16xbf16>
    %c16 = arith.constant 16 : index
    %c0_8 = arith.constant 0 : index
    %10 = vector.load %arg4[%c16, %c0_8] : memref<64x66xbf16, #tpu.memory_space<vmem>>, vector<16x66xbf16>
    %cst_9 = arith.constant dense<0.000000e+00> : vector<32x66xf32>
    %11 = tpu.matmul %9, %10, %cst_9 {dimension_numbers = #tpu.dot_dimension_numbers<[1], [0], [0], [1], [0, 0, 1, 1], [], []>} : vector<32x16xbf16>, vector<16x66xbf16>, vector<32x66xf32> -> vector<32x66xf32>
    %12 = arith.addf %7, %11 : vector<32x66xf32>
    %13 = vector.extract_strided_slice %4 {offsets = [2, 0], sizes = [32, 16], strides = [1, 1]} : vector<35x16xf32> to vector<32x16xf32>
    %14 = arith.truncf %13 : vector<32x16xf32> to vector<32x16xbf16>
    %c32 = arith.constant 32 : index
    %c0_10 = arith.constant 0 : index
    %15 = vector.load %arg4[%c32, %c0_10] : memref<64x66xbf16, #tpu.memory_space<vmem>>, vector<16x66xbf16>
    %cst_11 = arith.constant dense<0.000000e+00> : vector<32x66xf32>
    %16 = tpu.matmul %14, %15, %cst_11 {dimension_numbers = #tpu.dot_dimension_numbers<[1], [0], [0], [1], [0, 0, 1, 1], [], []>} : vector<32x16xbf16>, vector<16x66xbf16>, vector<32x66xf32> -> vector<32x66xf32>
    %17 = arith.addf %12, %16 : vector<32x66xf32>
    %18 = vector.extract_strided_slice %4 {offsets = [3, 0], sizes = [32, 16], strides = [1, 1]} : vector<35x16xf32> to vector<32x16xf32>
    %19 = arith.truncf %18 : vector<32x16xf32> to vector<32x16xbf16>
    %c48 = arith.constant 48 : index
    %c0_12 = arith.constant 0 : index
    %20 = vector.load %arg4[%c48, %c0_12] : memref<64x66xbf16, #tpu.memory_space<vmem>>, vector<16x66xbf16>
    %cst_13 = arith.constant dense<0.000000e+00> : vector<32x66xf32>
    %21 = tpu.matmul %19, %20, %cst_13 {dimension_numbers = #tpu.dot_dimension_numbers<[1], [0], [0], [1], [0, 0, 1, 1], [], []>} : vector<32x16xbf16>, vector<16x66xbf16>, vector<32x66xf32> -> vector<32x66xf32>
    %22 = arith.addf %17, %21 : vector<32x66xf32>
    %c0_14 = arith.constant 0 : index
    %c0_15 = arith.constant 0 : index
    %c0_16 = arith.constant 0 : index
    %23 = vector.load %arg5[%c0_14, %c0_15, %c0_16] : memref<1x32x66xf32, #tpu.memory_space<vmem>>, vector<1x32x66xf32>
    %24 = vector.shape_cast %23 : vector<1x32x66xf32> to vector<32x66xf32>
    %25 = vector.shape_cast %22 : vector<32x66xf32> to vector<1x32x66xf32>
    tpu.vector_store %arg5[%c0_14, %c0_15, %c0_16], %25 {strides = array<i32>} : memref<1x32x66xf32, #tpu.memory_space<vmem>>, vector<1x32x66xf32>,
    return
  }
  func.func @transform_0(%arg0: i32, %arg1: i32) -> (i32, i32, i32) {
    %c0_i32 = arith.constant 0 : i32
    %c0_i32_0 = arith.constant 0 : i32
    return %arg0, %arg1, %c0_i32 : i32, i32, i32
  }
  func.func @transform_1(%arg0: i32, %arg1: i32) -> (i32, i32, i32, i32) {
    %c0_i32 = arith.constant 0 : i32
    %c0_i32_0 = arith.constant 0 : i32
    %c0_i32_1 = arith.constant 0 : i32
    return %arg0, %arg1, %c0_i32, %c0_i32_0 : i32, i32, i32, i32
  }
  func.func @transform_2(%arg0: i32, %arg1: i32) -> (i32, i32) {
    %c0_i32 = arith.constant 0 : i32
    %c0_i32_0 = arith.constant 0 : i32
    %c0_i32_1 = arith.constant 0 : i32
    return %c0_i32, %c0_i32_0 : i32, i32
  }
  func.func @transform_3(%arg0: i32, %arg1: i32) -> (i32, i32, i32) {
    %c0_i32 = arith.constant 0 : i32
    %c0_i32_0 = arith.constant 0 : i32
    return %arg0, %arg1, %c0_i32 : i32, i32, i32
  }
}

</mosaic_0001>

<bundles_post_ra>
// kernel: tpu_custom_call.1
= control target key start
LH: loop header
LB: loop body
LE: loop exit
PB: predicated region body
PF: predicated region fallthrough
CT: control target
= control target key end

     0   :  { %s901_s12 = smov 0   ;;  %s903_s13 = smov 0   ;;  %s1011_s0 = inlined_call_operand.vmem [shape: f32[2,35,16], index: 0, kind: input, shape index: {}]   ;;  %s1012_s1 = inlined_call_operand.vmem [shape: f32[2,1,3,16], index: 1, kind: input, shape index: {}]   ;;  %s1013_s2 = inlined_call_operand.vmem [shape: bf16[64,66], index: 2, kind: input, shape index: {}]   ;;  %s1014_s3 = inlined_call_operand.vmem [shape: f32[2,21,66], index: 3, kind: output, shape index: {}]  }
   0x1   :  { %s905_s14 = smov 0   ;;  %s907_s15 = smov 0  }
   0x2   :  { %s909_s16 = smov 0  }
   0x3 LB: > { %s701_s17 = sadd.s32 4294967295, %s875_s16   ;;  %s25_s18 = sadd.s32 1, %s871_s15  ;;  %s875_s16 = sphi %s909_s16, %s13_s16   ;;  %s871_s15 = sphi %s907_s15, %s1019_s15   ;;  %s867_s14 = sphi %s905_s14, %s1018_s14   ;;  %s863_s13 = sphi %s903_s13, %s1017_s13   ;;  %s859_s12 = sphi %s901_s12, %s1016_s12  }
   0x4   : > { %p27_p0 = scmp.ge.s32.totalorder %s25_s18, 2  ;;  %s111_s19 = sadd.s32 1, %s863_s13 }
   0x5   : > { %p121_p1 = scmp.ne.s32.totalorder %s863_s13, %s859_s12  ;;  %p122_p2 = scmp.eq.s32.totalorder %s701_s17, 1 }
   0x6   : > { %s1021_s18 = smov (%p27_p0, %s25_s18), 0  ;;  %p705_p4 = scmp.ge.s32.totalorder %s875_s16, 1 }
   0x7   : > { %p933_p3 = por %p122_p2, %p121_p1  ;;  %s106_s21 = ssub.s32 %s871_s15, %s1021_s18 }
   0x8   : > { %p180_p5 = scmp.lt.s32.totalorder %s875_s16, 3  ;;  %p109_p6 = scmp.eq.s32.totalorder %s106_s21, 0 }
   0xa   : > { %p181_p7 = pnand %p705_p4, %p180_p5 }
   0xb   : > { %s942_s22 = scalar_select %p109_p6, %s863_s13, %s111_s19  }
   0xc   : > { %184 = sbr.rel (%p181_p7) target bundleno = 197 (0xc5), region = 32  ;;  %p223_p8 = scmp.lt.s32.totalorder (!%p181_p7), %s867_s14, 1 }
   0xd   : > { %s215_s19 = sand.u32 (!%p181_p7), 1, %s859_s12  }
   0xe   : > { %s706_s21 = sshll.u32 (!%p181_p7), %s215_s19, 5 }
   0xf   : > { %s979_s23 = scalar_lea.vmem (!%p181_p7), [#allocation2], %s706_s21  }
  0x11   : > { %v743_v0 = vld [vmem:[%s1013_s2] sm:$0xff]  ;;  %v745_v1 = vld [vmem:[%s1013_s2 + $0x10] sm:$0xff]  ;;  %v744_v2 = vld [vmem:[%s1013_s2 + $0x8] sm:$0xff]  ;;  %s224_s4 = scalar_select %p223_p8, %s867_s14, 1  ;;  %vm286_vm0 = vcmask 130048   ;;  %vm346_vm1 = vcmask 1046528  }
  0x12   : > { %v746_v3 = vld [vmem:[%s1013_s2 + $0x18] sm:$0xff]  ;;  %329 = vmatpush.bf16.msra.mxu1 %v743_v0  ;;  %371 = vmatpush.bf16.msra.mxu2 %v745_v1  ;;  %vm259_vm2 = vsmask.f32 7424  ;;  %vm389_vm3 = vsmask.f32 6400  ;;  %vm438_vm4 = vcmask 539648  }
  0x13   : > { %300 = vmatpush.bf16.msra.mxu0 %v744_v2  ;;  %422 = vmatpush.bf16.msra.mxu3 %v746_v3  ;;  %s747_s5 = smul.u32 40, %s224_s4  ;;  %s708_s9 = sshll.u32 %s224_s4, 2 }
  0x14   : > { %s242_s17 = scalar_lea.vmem %s1012_s1, %s708_s9  ;;  %s748_s12 = smul.u32 (%p933_p3), 24, %s867_s14 }
  0x15   : > { %s230_s8 = scalar_lea.vmem %s1011_s0, %s747_s5  ;;  %v251_v19 = vld [vmem:[%s242_s17] sm:$0x7]  ;;  %s877_s27 = smov (%p933_p3), 0  }
  0x16   : > { %v247_v4 = vld [vmem:[%s230_s8] sm:$0xff]  ;;  %v248_v5 = vld [vmem:[%s230_s8 + $0x8] sm:$0xff]  ;;  %v249_v6 = vld [vmem:[%s230_s8 + $0x10] sm:$0xff]  ;;  %v256_v27 = vpack.c.bf16 %v251_v19, %v251_v19  ;;  %s457_s26 = scalar_lea.vmem (%p933_p3), %s1014_s3, %s748_s12  }
  0x17   : > { %v252_v7 = vpack.c.bf16 %v248_v5, %v247_v4  ;;  %v250_v8 = vld [vmem:[%s230_s8 + $0x18] sm:$0xff] }
  0x18   : > { %v253_v9 = vpack.c.bf16 %v250_v8, %v249_v6  ;;  %v276_v30 = vshll.u32 %v256_v27, 16  ;;  %v397_v31 = vshrl.u32 %v256_v27, 16  ;;  %v350_v32 = vrot.slane %v256_v27, 1 }
  0x19   : > { %719 = vmatmul.msk.bf16.vlgmr.msra.gmra.mxu1 %vm286_vm0, %v252_v7  ;;  %v347_v10 = vrot.slane %v252_v7, 1  ;;  %v261_v11 = vshrl.u32 %v252_v7, 16  ;;  %v263_v12 = vshll.u32 %v252_v7, 16 }
  0x1a   : > { %v348_v13 = vrot.slane %v253_v9, 1  ;;  %v268_v14 = vshll.u32 %v253_v9, 16  ;;  %v272_v15 = vshrl.u32 %v253_v9, 16  ;;  %v399_v33 = vrot.slane %v397_v31, 1 }
  0x1b   : > { %v265_v16 = vrot.slane %v263_v12, 1  ;;  %v390_v17 = vrot.slane %v261_v11, 1  ;;  %v391_v18 = vrot.slane %v263_v12, 2  ;;  %v400_v34 = vrot.slane %v276_v30, 2 }
  0x1c   : > { %v349_v20 = vsel %vm346_vm1, %v347_v10, %v348_v13  ;;  %v270_v21 = vrot.slane %v268_v14, 1  ;;  %v393_v22 = vrot.slane %v272_v15, 1  ;;  %v394_v23 = vrot.slane %v268_v14, 2 }
  0x1d   : > { %725 = vmatmul.msk.bf16.vlgmr.msra.gmra.mxu2 %vm286_vm0, %v349_v20  ;;  %v266_v24 = vor.u32 %v265_v16, %v261_v11  ;;  %v392_v25 = vor.u32 %v391_v18, %v390_v17  ;;  %v278_v36 = vrot.slane %v276_v30, 1  ;;  %v351_v37 = vsel %vm346_vm1, %v348_v13, %v350_v32 }
  0x1e   : > { %v395_v26 = vor.u32 %v394_v23, %v393_v22  ;;  %v274_v35 = vor.u32 %v272_v15, %v270_v21  ;;  %v401_v38 = vor.u32 %v400_v34, %v399_v33 }
  0x1f   : > { %v271_v28 = vsel %vm259_vm2, %v266_v24, %v270_v21 }
  0x20   : > { %713 = vmatmul.msk.bf16.vlgmr.msra.gmra.mxu0 %vm286_vm0, %v271_v28  ;;  %v396_v29 = vsel %vm389_vm3, %v392_v25, %v395_v26  ;;  %v279_v39 = vsel %vm259_vm2, %v274_v35, %v278_v36  ;;  %v402_v40 = vsel %vm389_vm3, %v395_v26, %v401_v38 }
  0x21   : > { %731 = vmatmul.msk.bf16.vlgmr.msra.gmra.mxu3 %vm286_vm0, %v396_v29 }
  0x29   : > { %720 = vmatmul.msk.bf16.gmra.mxu1 %vm286_vm0, %v253_v9 }
  0x2d   : > { %726 = vmatmul.msk.bf16.gmra.mxu2 %vm286_vm0, %v351_v37 }
  0x30   : > { %714 = vmatmul.msk.bf16.gmra.mxu0 %vm286_vm0, %v279_v39 }
  0x31   : > { %732 = vmatmul.msk.bf16.gmra.mxu3 %vm286_vm0, %v402_v40 }
  0x96   : > { %v331_v41 = vpop.f32.mrf.mxu1 }
  0x9d   : > { %v302_v42 = vpop.f32.mrf.mxu0 }
  0x9e   : > { %v332_v43 = vadd.f32 %v331_v41, %v302_v42  ;;  %v333_v46 = vpop.f32.mrf.mxu1 }
  0xa0   : > { %v373_v44 = vpop.f32.mrf.mxu2 }
  0xa1   : > { %v383_v45 = vadd.f32 %v373_v44, %v332_v43 }
  0xa4   : > { %v424_v47 = vpop.f32.mrf.mxu3 }
  0xa5   : > { %v434_v48 = vadd.f32 %v424_v47, %v383_v45  ;;  %v304_v49 = vpop.f32.mrf.mxu0 }
  0xa6   : > { %v334_v50 = vadd.f32 %v333_v46, %v304_v49  ;;  %v336_v53 = vpop.f32.mrf.mxu1 }
  0xa7   : > { %439 = vst.msk [vmem:[%s979_s23] sm:$0xff] %vm438_vm4, %v434_v48 }
  0xa8   : > { %v375_v51 = vpop.f32.mrf.mxu2 }
  0xa9   : > { %v384_v52 = vadd.f32 %v375_v51, %v334_v50 }
  0xac   : > { %v426_v54 = vpop.f32.mrf.mxu3 }
  0xad   : > { %v435_v55 = vadd.f32 %v426_v54, %v384_v52  ;;  %v307_v56 = vpop.f32.mrf.mxu0 }
  0xae   : > { %v337_v57 = vadd.f32 %v336_v53, %v307_v56  ;;  %v338_v63 = vpop.f32.mrf.mxu1 }
  0xaf   : > { %440 = vst.msk [vmem:[%s979_s23 + $0x8] sm:$0xff] %vm438_vm4, %v435_v55 }
  0xb0   : > { %v378_v58 = vpop.f32.mrf.mxu2 }
  0xb1   : > { %v385_v59 = vadd.f32 %v378_v58, %v337_v57 }
  0xb4   : > { %v429_v60 = vpop.f32.mrf.mxu3 }
  0xb5   : > { %v436_v61 = vadd.f32 %v429_v60, %v385_v59  ;;  %v309_v62 = vpop.f32.mrf.mxu0 }
  0xb7   : > { %441 = vst.msk [vmem:[%s979_s23 + $0x10] sm:$0xff] %vm438_vm4, %v436_v61 }
  0xb8   : > { %v380_v0 = vpop.f32.mrf.mxu2  ;;  %449 = sbr.rel (!%p933_p3) target bundleno = 197 (0xc5), region = 36 }
  0xbc   : > { %v431_v1 = vpop.f32.mrf.mxu3 }
  0xbd LB: >> { %v529_v2 = vld [vmem:[%s979_s23] sm:$0xff]  ;;  %v531_v3 = vld [vmem:[%s979_s23 + $0x8] sm:$0xff]  ;;  %s523_s27 = sadd.s32 1, %s879_s27   ;;  %s879_s27 = sphi %s877_s27, %s523_s27  }
  0xbe   : >> { %v533_v4 = vld [vmem:[%s979_s23 + $0x10] sm:$0xff]  ;;  %530 = vst [vmem:[%s457_s26] sm:$0xff] %v529_v2  ;;  %p522_p9 = scmp.ge.s32.totalorder %s523_s27, 1 }
  0xbf   : >> { %532 = vst [vmem:[%s457_s26 + $0x8] sm:$0xff] %v531_v3 }
  0xc0   : >> { %534 = vst [vmem:[%s457_s26 + $0x10] sm:$0xff] %v533_v4  ;;  %525 = sbr.rel (!%p522_p9) target bundleno = 189 (0xbd), region = 125 }
  0xc5 PF: > { %s13_s16 = sadd.s32 1, %s875_s16   ;;  %s1016_s12 = smov %s863_s13 }
  0xc6   : > { %p10_p10 = scmp.ge.s32.totalorder %s13_s16, 4   ;;  %s1017_s13 = smov %s942_s22 }
  0xc7   : > { %s1018_s14 = smov %s871_s15  ;;  %s1019_s15 = smov %s1021_s18 }
  0xc8   :  { %12 = sbr.rel (!%p10_p10) target bundleno = 3 (0x3), region = 147 }

</bundles_post_ra>
